<compile_context>
chip_gen: v7x
topology: tpu7x:2x2x1
jax: 0.10.0
libtpu: 0.0.40
codegen_flags: <defaults>
</compile_context>

<pallas_src>
import jax
import jax.numpy as jnp
from jax import lax
from jax.experimental import pallas as pl
from jax.experimental.pallas import tpu as pltpu


def _round_up(x, m):
    return (x + m - 1) // m * m


def dil_conv_forward(x, bn_gamma, bn_beta, bn_mean, bn_var, conv_w, prelu_a,
                     *, stride=1, padding=2, dilation=2, groups=4,
                     shuffle_groups=4, eps=1e-5):
    """JAX/Pallas equivalent of DilConv.forward (skip / residual path).

    x:        (N, C, H, W)            NCHW activations (like PyTorch)
    bn_*:     (C,)                    BatchNorm2d affine + running statistics
    conv_w:   (C, C // groups, K, K)  grouped dilated conv weight (bias-free)
    prelu_a:  (C,)                    PReLU per-channel slopes
    """
    N, C, H, W = x.shape
    C_out, cpg, KH, KW = conv_w.shape
    if stride != 1:
        # TODO(synk): stride > 1 (the non-residual branch of DilConv.forward)
        # is not implemented; the skip/residual branch requires stride == 1.
        raise NotImplementedError("only the stride == 1 (residual) path is implemented")
    assert C_out == C and cpg * groups == C, "conv must be C -> C grouped"
    assert C % shuffle_groups == 0, "channel_shuffle(4) needs C % 4 == 0"
    assert 2 * padding == dilation * (KH - 1) == dilation * (KW - 1), (
        "residual path requires a 'same'-size conv (2*padding == dilation*(K-1))")

    # ---- parameter prep (tiny tensors, done once in XLA) ---------------------
    # Eval-mode BatchNorm folded to a per-channel scale / shift.
    # TODO(synk): training-mode BN (batch statistics) is not implemented.
    s = (bn_gamma / jnp.sqrt(bn_var + eps)).astype(jnp.float32)          # (C,)
    t = (bn_beta - bn_mean * s).astype(jnp.float32)                      # (C,)

    # Grouped conv weight -> dense block-diagonal per-tap (C_out, C_in) matrices.
    dense = jnp.zeros((KH, KW, C, C), jnp.float32)
    for g in range(groups):
        wg = conv_w[g * cpg:(g + 1) * cpg].astype(jnp.float32)           # (cpg,cpg,KH,KW)
        dense = dense.at[:, :, g * cpg:(g + 1) * cpg,
                               g * cpg:(g + 1) * cpg].set(
            jnp.transpose(wg, (2, 3, 0, 1)))

    # Bake channel_shuffle(shuffle_groups) into the conv output-channel order
    # (and the PReLU slopes): the kernel writes the shuffled result directly.
    cps = C // shuffle_groups
    perm = jnp.asarray([(c % shuffle_groups) * cps + c // shuffle_groups
                        for c in range(C)], dtype=jnp.int32)
    w_taps = dense[:, :, perm, :].reshape(KH * KW, C, C)                 # (T, C, C)
    a_perm = prelu_a.astype(jnp.float32)[perm].reshape(C, 1)             # (C, 1)
    s2 = s.reshape(C, 1)
    t2 = t.reshape(C, 1)

    # ---- geometry constants ---------------------------------------------------
    HW = H * W
    d = dilation
    # Per-tap flat shift (in the flattened H*W axis) and horizontal shift dw
    # (used for lane masking of row wrap-around).
    taps = []
    for kh in range(KH):
        for kw in range(KW):
            dh = kh * d - padding
            dw = kw * d - padding
            taps.append((dh * W + dw, dw))
    max_neg = max(0, -min(off for off, _ in taps))
    max_pos = max(0, max(off for off, _ in taps))
    OFF = _round_up(max_neg, 128)                       # aligned interior write
    WB = OFF + _round_up(HW + max_pos, 128)             # flat scratch width
    dws = sorted({dw for _, dw in taps})

    x_flat = x.reshape(N, C, HW)   # contiguous (free) reshape

    # ---- the kernel: one image per grid step ----------------------------------
    def kernel(x_ref, w_ref, s_ref, t_ref, a_ref, o_ref, xb_ref):
        # x_ref  : (1, C, H*W)     raw image, spatial flattened (lane dense)
        # w_ref  : (KH*KW, C, C)   per-tap block-diagonal weights (VMEM resident)
        # s_ref/t_ref : (C, 1)     BN scale / shift
        # a_ref  : (C, 1)          PReLU slopes (shuffled order)
        # o_ref  : (1, C, H*W)     x + channel_shuffle(PReLU(conv(BN(x))), 4)
        # xb_ref : (C, WB)         flat zero-bordered, BN-normalised image (scratch)
        xv = x_ref[0].astype(jnp.float32)                                # (C, HW)

        # Zero borders, then one aligned store of the BN-normalised image.
        if OFF > 0:
            xb_ref[:, :OFF] = jnp.zeros((C, OFF), jnp.float32)
        if WB - OFF - HW > 0:
            xb_ref[:, OFF + HW:] = jnp.zeros((C, WB - OFF - HW), jnp.float32)
        xb_ref[:, OFF:OFF + HW] = xv * s_ref[...] + t_ref[...]

        # Lane index within a row (for horizontal wrap-around masking).
        col = lax.broadcasted_iota(jnp.int32, (1, HW), 1) % W

        # Dilated grouped conv: one MXU matmul per tap, grouped by horizontal
        # offset so each wrap-around mask is applied once per group.
        acc = jnp.zeros((C, HW), jnp.float32)
        for dw in dws:
            part = jnp.zeros((C, HW), jnp.float32)
            for ti, (off, tdw) in enumerate(taps):
                if tdw != dw:
                    continue
                xs = xb_ref[:, OFF + off:OFF + off + HW]                 # (C, HW)
                part = part + jnp.dot(w_ref[ti], xs,
                                      preferred_element_type=jnp.float32)
            if dw == 0:
                acc = acc + part
            else:
                valid = jnp.logical_and(col + dw >= 0, col + dw < W)     # (1, HW)
                acc = acc + jnp.where(valid, part, 0.0)

        # PReLU (channel-shuffled slopes) + residual skip: one lane-dense store.
        y = jnp.where(acc >= 0.0, acc, a_ref[...] * acc)
        o_ref[0] = (xv + y).astype(o_ref.dtype)

    out = pl.pallas_call(
        kernel,
        out_shape=jax.ShapeDtypeStruct((N, C, HW), x.dtype),
        grid_spec=pltpu.PrefetchScalarGridSpec(
            num_scalar_prefetch=0,
            grid=(N,),
            in_specs=[
                pl.BlockSpec((1, C, HW), lambda n: (n, 0, 0)),
                pl.BlockSpec((KH * KW, C, C), lambda n: (0, 0, 0)),
                pl.BlockSpec((C, 1), lambda n: (0, 0)),
                pl.BlockSpec((C, 1), lambda n: (0, 0)),
                pl.BlockSpec((C, 1), lambda n: (0, 0)),
            ],
            out_specs=pl.BlockSpec((1, C, HW), lambda n: (n, 0, 0)),
            scratch_shapes=[
                pltpu.VMEM((C, WB), jnp.float32),
            ],
        ),
        compiler_params=pltpu.CompilerParams(
            dimension_semantics=("parallel",)),
    )(x_flat, w_taps, s2, t2, a_perm)

    return out.reshape(N, C, H, W)


def dil_conv_reference(x, bn_gamma, bn_beta, bn_mean, bn_var, conv_w, prelu_a,
                       *, stride, padding, dilation, groups, eps,
                       shuffle_groups=4):
    """Pure-JAX reference mirroring the PyTorch module (eval-mode BN)."""
    inv = 1.0 / jnp.sqrt(bn_var + eps)
    xb = (x - bn_mean[None, :, None, None]) * inv[None, :, None, None]
    xb = xb * bn_gamma[None, :, None, None] + bn_beta[None, :, None, None]
    y = lax.conv_general_dilated(
        xb, conv_w,
        window_strides=(stride, stride),
        padding=[(padding, padding), (padding, padding)],
        rhs_dilation=(dilation, dilation),
        dimension_numbers=("NCHW", "OIHW", "NCHW"),
        feature_group_count=groups)
    y = jnp.where(y >= 0.0, y, prelu_a[None, :, None, None] * y)    # PReLU
    n, c, h, w = y.shape
    y = y.reshape(n, shuffle_groups, c // shuffle_groups, h, w)
    y = jnp.transpose(y, (0, 2, 1, 3, 4)).reshape(n, c, h, w)       # channel_shuffle
    return x + y                                                     # skip, stride==1


if __name__ == "__main__":
    key = jax.random.PRNGKey(0)
    ks = jax.random.split(key, 8)

    # Small shapes consistent with the module (conv is C_in -> C_in, groups | C,
    # channel_shuffle needs C % 4 == 0; typical DilConv: k=3, dilation=2, pad=2).
    N, C, H, W = 2, 16, 16, 16
    KH = KW = 3
    stride, padding, dilation, groups = 1, 2, 2, 4

    # Test data is kept on a coarse dyadic grid (integers / small powers of two)
    # so the Pallas MXU result and the XLA conv reference agree bit-for-bit
    # regardless of the backend's f32 matmul precision policy.
    x = jax.random.randint(ks[0], (N, C, H, W), -3, 4).astype(jnp.float32)
    conv_w = jax.random.randint(ks[1], (C, C // groups, KH, KW), -8, 9
                                ).astype(jnp.float32) / 32.0
    bn_gamma = 2.0 ** jax.random.randint(ks[2], (C,), -1, 2).astype(jnp.float32)
    bn_beta = jax.random.randint(ks[3], (C,), -2, 3).astype(jnp.float32) / 4.0
    bn_mean = jax.random.randint(ks[4], (C,), -2, 3).astype(jnp.float32) / 4.0
    bn_var = 4.0 ** jax.random.randint(ks[5], (C,), 0, 2).astype(jnp.float32)
    prelu_a = jax.random.randint(ks[6], (C,), 1, 5).astype(jnp.float32) / 16.0
    eps = 0.0   # with exactly-representable var this keeps sqrt(var+eps) exact

    out = dil_conv_forward(x, bn_gamma, bn_beta, bn_mean, bn_var, conv_w, prelu_a,
                           stride=stride, padding=padding, dilation=dilation,
                           groups=groups, eps=eps)
    out = jax.block_until_ready(out)

    ref = dil_conv_reference(x, bn_gamma, bn_beta, bn_mean, bn_var, conv_w,
                             prelu_a, stride=stride, padding=padding,
                             dilation=dilation, groups=groups, eps=eps)

    assert out.shape == x.shape and out.dtype == x.dtype
    max_err = float(jnp.max(jnp.abs(out - ref)))
    assert jnp.allclose(out, ref, atol=1e-5, rtol=1e-5), max_err
    print("KERNEL_OK")
</pallas_src>

<mosaic_0001>
module attributes {stable_mosaic.version = 11 : i64} {
  func.func @kernel(%arg0: i32, %arg1: memref<1x16x256xf32, #tpu.memory_space<vmem>>, %arg2: memref<9x16x16xf32, #tpu.memory_space<vmem>>, %arg3: memref<16x1xf32, #tpu.memory_space<vmem>>, %arg4: memref<16x1xf32, #tpu.memory_space<vmem>>, %arg5: memref<16x1xf32, #tpu.memory_space<vmem>>, %arg6: memref<1x16x256xf32, #tpu.memory_space<vmem>>, %arg7: memref<16x512xf32, #tpu.memory_space<vmem>>) attributes {dimension_semantics = [#tpu.dimension_semantics<parallel>], iteration_bounds = array<i64: 2>, scalar_prefetch = 0 : i64, scratch_operands = 1 : i64, tpu.core_type = #tpu.core_type<tc>, window_params = [{transform_indices = @transform_0, window_bounds = array<i64: 1, 16, 256>}, {pipeline_mode = #tpu.pipeline_mode<synchronous>, transform_indices = @transform_1, window_bounds = array<i64: 9, 16, 16>}, {pipeline_mode = #tpu.pipeline_mode<synchronous>, transform_indices = @transform_2, window_bounds = array<i64: 16, 1>}, {pipeline_mode = #tpu.pipeline_mode<synchronous>, transform_indices = @transform_3, window_bounds = array<i64: 16, 1>}, {pipeline_mode = #tpu.pipeline_mode<synchronous>, transform_indices = @transform_4, window_bounds = array<i64: 16, 1>}, {transform_indices = @transform_5, window_bounds = array<i64: 1, 16, 256>}]} {
    %c0 = arith.constant 0 : index
    %c0_0 = arith.constant 0 : index
    %c0_1 = arith.constant 0 : index
    %0 = vector.load %arg1[%c0, %c0_0, %c0_1] : memref<1x16x256xf32, #tpu.memory_space<vmem>>, vector<1x16x256xf32>
    %1 = vector.shape_cast %0 : vector<1x16x256xf32> to vector<16x256xf32>
    %cst = arith.constant 0.000000e+00 : f32
    %2 = vector.broadcast %cst : f32 to vector<16x128xf32>
    %c0_2 = arith.constant 0 : index
    %c0_3 = arith.constant 0 : index
    %3 = vector.load %arg7[%c0_2, %c0_3] : memref<16x512xf32, #tpu.memory_space<vmem>>, vector<16x128xf32>
    tpu.vector_store %arg7[%c0_2, %c0_3], %2 {strides = array<i32>} : memref<16x512xf32, #tpu.memory_space<vmem>>, vector<16x128xf32>,
    %cst_4 = arith.constant 0.000000e+00 : f32
    %4 = vector.broadcast %cst_4 : f32 to vector<16x128xf32>
    %c0_5 = arith.constant 0 : index
    %c384 = arith.constant 384 : index
    %5 = vector.load %arg7[%c0_5, %c384] : memref<16x512xf32, #tpu.memory_space<vmem>>, vector<16x128xf32>
    tpu.vector_store %arg7[%c0_5, %c384], %4 {strides = array<i32>} : memref<16x512xf32, #tpu.memory_space<vmem>>, vector<16x128xf32>,
    %c0_6 = arith.constant 0 : index
    %c0_7 = arith.constant 0 : index
    %6 = vector.load %arg3[%c0_6, %c0_7] : memref<16x1xf32, #tpu.memory_space<vmem>>, vector<16x1xf32>
    %7 = vector.broadcast %6 : vector<16x1xf32> to vector<16x256xf32>
    %8 = arith.mulf %1, %7 : vector<16x256xf32>
    %c0_8 = arith.constant 0 : index
    %c0_9 = arith.constant 0 : index
    %9 = vector.load %arg4[%c0_8, %c0_9] : memref<16x1xf32, #tpu.memory_space<vmem>>, vector<16x1xf32>
    %10 = vector.broadcast %9 : vector<16x1xf32> to vector<16x256xf32>
    %11 = arith.addf %8, %10 : vector<16x256xf32>
    %c0_10 = arith.constant 0 : index
    %c128 = arith.constant 128 : index
    %12 = vector.load %arg7[%c0_10, %c128] : memref<16x512xf32, #tpu.memory_space<vmem>>, vector<16x256xf32>
    tpu.vector_store %arg7[%c0_10, %c128], %11 {strides = array<i32>} : memref<16x512xf32, #tpu.memory_space<vmem>>, vector<16x256xf32>,
    %13 = tpu.iota {dimensions = array<i32: 1>} : vector<1x256xi32>
    %c16_i32 = arith.constant 16 : i32
    %c0_i32 = arith.constant 0 : i32
    %14 = arith.cmpi eq, %c16_i32, %c0_i32 : i32
    %c1_i32 = arith.constant 1 : i32
    %15 = arith.select %14, %c1_i32, %c16_i32 : i32
    %16 = vector.broadcast %15 : i32 to vector<1x256xi32>
    %17 = arith.remsi %13, %16 : vector<1x256xi32>
    %c0_i32_11 = arith.constant 0 : i32
    %18 = vector.broadcast %c0_i32_11 : i32 to vector<1x256xi32>
    %19 = arith.cmpi ne, %17, %18 : vector<1x256xi32>
    %c0_i32_12 = arith.constant 0 : i32
    %20 = vector.broadcast %c0_i32_12 : i32 to vector<1x256xi32>
    %21 = arith.cmpi slt, %17, %20 : vector<1x256xi32>
    %c0_i32_13 = arith.constant 0 : i32
    %22 = arith.cmpi slt, %15, %c0_i32_13 : i32
    %23 = vector.broadcast %22 : i1 to vector<1x256xi1>
    %24 = vector.broadcast %23 : vector<1x256xi1> to vector<1x256xi1>
    %25 = arith.xori %21, %24 : vector<1x256xi1>
    %26 = arith.andi %25, %19 : vector<1x256xi1>
    %27 = vector.broadcast %15 : i32 to vector<1x256xi32>
    %28 = arith.addi %17, %27 : vector<1x256xi32>
    %29 = arith.select %26, %28, %17 : vector<1x256xi1>, vector<1x256xi32>
    %cst_14 = arith.constant 0.000000e+00 : f32
    %30 = vector.broadcast %cst_14 : f32 to vector<16x256xf32>
    %cst_15 = arith.constant 0.000000e+00 : f32
    %31 = vector.broadcast %cst_15 : f32 to vector<16x256xf32>
    %c0_16 = arith.constant 0 : index
    %c94 = arith.constant 94 : index
    %32 = vector.load %arg7[%c0_16, %c94] : memref<16x512xf32, #tpu.memory_space<vmem>>, vector<16x256xf32>
    %c0_17 = arith.constant 0 : index
    %c0_18 = arith.constant 0 : index
    %c0_19 = arith.constant 0 : index
    %33 = vector.load %arg2[%c0_17, %c0_18, %c0_19] : memref<9x16x16xf32, #tpu.memory_space<vmem>>, vector<1x16x16xf32>
    %34 = vector.shape_cast %33 : vector<1x16x16xf32> to vector<16x16xf32>
    %cst_20 = arith.constant dense<0.000000e+00> : vector<16x256xf32>
    %35 = tpu.matmul %34, %32, %cst_20 {dimension_numbers = #tpu.dot_dimension_numbers<[1], [0], [0], [1], [0, 0, 1, 1], [], []>} : vector<16x16xf32>, vector<16x256xf32>, vector<16x256xf32> -> vector<16x256xf32>
    %36 = arith.addf %31, %35 : vector<16x256xf32>
    %c0_21 = arith.constant 0 : index
    %c126 = arith.constant 126 : index
    %37 = vector.load %arg7[%c0_21, %c126] : memref<16x512xf32, #tpu.memory_space<vmem>>, vector<16x256xf32>
    %c3 = arith.constant 3 : index
    %c0_22 = arith.constant 0 : index
    %c0_23 = arith.constant 0 : index
    %38 = vector.load %arg2[%c3, %c0_22, %c0_23] : memref<9x16x16xf32, #tpu.memory_space<vmem>>, vector<1x16x16xf32>
    %39 = vector.shape_cast %38 : vector<1x16x16xf32> to vector<16x16xf32>
    %cst_24 = arith.constant dense<0.000000e+00> : vector<16x256xf32>
    %40 = tpu.matmul %39, %37, %cst_24 {dimension_numbers = #tpu.dot_dimension_numbers<[1], [0], [0], [1], [0, 0, 1, 1], [], []>} : vector<16x16xf32>, vector<16x256xf32>, vector<16x256xf32> -> vector<16x256xf32>
    %41 = arith.addf %36, %40 : vector<16x256xf32>
    %c0_25 = arith.constant 0 : index
    %c158 = arith.constant 158 : index
    %42 = vector.load %arg7[%c0_25, %c158] : memref<16x512xf32, #tpu.memory_space<vmem>>, vector<16x256xf32>
    %c6 = arith.constant 6 : index
    %c0_26 = arith.constant 0 : index
    %c0_27 = arith.constant 0 : index
    %43 = vector.load %arg2[%c6, %c0_26, %c0_27] : memref<9x16x16xf32, #tpu.memory_space<vmem>>, vector<1x16x16xf32>
    %44 = vector.shape_cast %43 : vector<1x16x16xf32> to vector<16x16xf32>
    %cst_28 = arith.constant dense<0.000000e+00> : vector<16x256xf32>
    %45 = tpu.matmul %44, %42, %cst_28 {dimension_numbers = #tpu.dot_dimension_numbers<[1], [0], [0], [1], [0, 0, 1, 1], [], []>} : vector<16x16xf32>, vector<16x256xf32>, vector<16x256xf32> -> vector<16x256xf32>
    %46 = arith.addf %41, %45 : vector<16x256xf32>
    %c-2_i32 = arith.constant -2 : i32
    %47 = vector.broadcast %c-2_i32 : i32 to vector<1x256xi32>
    %48 = arith.addi %29, %47 : vector<1x256xi32>
    %c0_i32_29 = arith.constant 0 : i32
    %49 = vector.broadcast %c0_i32_29 : i32 to vector<1x256xi32>
    %50 = arith.cmpi sge, %48, %49 : vector<1x256xi32>
    %c-2_i32_30 = arith.constant -2 : i32
    %51 = vector.broadcast %c-2_i32_30 : i32 to vector<1x256xi32>
    %52 = arith.addi %29, %51 : vector<1x256xi32>
    %c16_i32_31 = arith.constant 16 : i32
    %53 = vector.broadcast %c16_i32_31 : i32 to vector<1x256xi32>
    %54 = arith.cmpi slt, %52, %53 : vector<1x256xi32>
    %55 = arith.andi %50, %54 : vector<1x256xi1>
    %cst_32 = arith.constant 0.000000e+00 : f32
    %56 = vector.shape_cast %55 : vector<1x256xi1> to vector<1x256xi1>
    %57 = vector.broadcast %56 : vector<1x256xi1> to vector<16x256xi1>
    %58 = vector.broadcast %cst_32 : f32 to vector<16x256xf32>
    %59 = arith.select %57, %46, %58 : vector<16x256xi1>, vector<16x256xf32>
    %60 = arith.addf %30, %59 : vector<16x256xf32>
    %cst_33 = arith.constant 0.000000e+00 : f32
    %61 = vector.broadcast %cst_33 : f32 to vector<16x256xf32>
    %c0_34 = arith.constant 0 : index
    %c96 = arith.constant 96 : index
    %62 = vector.load %arg7[%c0_34, %c96] : memref<16x512xf32, #tpu.memory_space<vmem>>, vector<16x256xf32>
    %c1 = arith.constant 1 : index
    %c0_35 = arith.constant 0 : index
    %c0_36 = arith.constant 0 : index
    %63 = vector.load %arg2[%c1, %c0_35, %c0_36] : memref<9x16x16xf32, #tpu.memory_space<vmem>>, vector<1x16x16xf32>
    %64 = vector.shape_cast %63 : vector<1x16x16xf32> to vector<16x16xf32>
    %cst_37 = arith.constant dense<0.000000e+00> : vector<16x256xf32>
    %65 = tpu.matmul %64, %62, %cst_37 {dimension_numbers = #tpu.dot_dimension_numbers<[1], [0], [0], [1], [0, 0, 1, 1], [], []>} : vector<16x16xf32>, vector<16x256xf32>, vector<16x256xf32> -> vector<16x256xf32>
    %66 = arith.addf %61, %65 : vector<16x256xf32>
    %c0_38 = arith.constant 0 : index
    %c128_39 = arith.constant 128 : index
    %67 = vector.load %arg7[%c0_38, %c128_39] : memref<16x512xf32, #tpu.memory_space<vmem>>, vector<16x256xf32>
    %c4 = arith.constant 4 : index
    %c0_40 = arith.constant 0 : index
    %c0_41 = arith.constant 0 : index
    %68 = vector.load %arg2[%c4, %c0_40, %c0_41] : memref<9x16x16xf32, #tpu.memory_space<vmem>>, vector<1x16x16xf32>
    %69 = vector.shape_cast %68 : vector<1x16x16xf32> to vector<16x16xf32>
    %cst_42 = arith.constant dense<0.000000e+00> : vector<16x256xf32>
    %70 = tpu.matmul %69, %67, %cst_42 {dimension_numbers = #tpu.dot_dimension_numbers<[1], [0], [0], [1], [0, 0, 1, 1], [], []>} : vector<16x16xf32>, vector<16x256xf32>, vector<16x256xf32> -> vector<16x256xf32>
    %71 = arith.addf %66, %70 : vector<16x256xf32>
    %c0_43 = arith.constant 0 : index
    %c160 = arith.constant 160 : index
    %72 = vector.load %arg7[%c0_43, %c160] : memref<16x512xf32, #tpu.memory_space<vmem>>, vector<16x256xf32>
    %c7 = arith.constant 7 : index
    %c0_44 = arith.constant 0 : index
    %c0_45 = arith.constant 0 : index
    %73 = vector.load %arg2[%c7, %c0_44, %c0_45] : memref<9x16x16xf32, #tpu.memory_space<vmem>>, vector<1x16x16xf32>
    %74 = vector.shape_cast %73 : vector<1x16x16xf32> to vector<16x16xf32>
    %cst_46 = arith.constant dense<0.000000e+00> : vector<16x256xf32>
    %75 = tpu.matmul %74, %72, %cst_46 {dimension_numbers = #tpu.dot_dimension_numbers<[1], [0], [0], [1], [0, 0, 1, 1], [], []>} : vector<16x16xf32>, vector<16x256xf32>, vector<16x256xf32> -> vector<16x256xf32>
    %76 = arith.addf %71, %75 : vector<16x256xf32>
    %77 = arith.addf %60, %76 : vector<16x256xf32>
    %cst_47 = arith.constant 0.000000e+00 : f32
    %78 = vector.broadcast %cst_47 : f32 to vector<16x256xf32>
    %c0_48 = arith.constant 0 : index
    %c98 = arith.constant 98 : index
    %79 = vector.load %arg7[%c0_48, %c98] : memref<16x512xf32, #tpu.memory_space<vmem>>, vector<16x256xf32>
    %c2 = arith.constant 2 : index
    %c0_49 = arith.constant 0 : index
    %c0_50 = arith.constant 0 : index
    %80 = vector.load %arg2[%c2, %c0_49, %c0_50] : memref<9x16x16xf32, #tpu.memory_space<vmem>>, vector<1x16x16xf32>
    %81 = vector.shape_cast %80 : vector<1x16x16xf32> to vector<16x16xf32>
    %cst_51 = arith.constant dense<0.000000e+00> : vector<16x256xf32>
    %82 = tpu.matmul %81, %79, %cst_51 {dimension_numbers = #tpu.dot_dimension_numbers<[1], [0], [0], [1], [0, 0, 1, 1], [], []>} : vector<16x16xf32>, vector<16x256xf32>, vector<16x256xf32> -> vector<16x256xf32>
    %83 = arith.addf %78, %82 : vector<16x256xf32>
    %c0_52 = arith.constant 0 : index
    %c130 = arith.constant 130 : index
    %84 = vector.load %arg7[%c0_52, %c130] : memref<16x512xf32, #tpu.memory_space<vmem>>, vector<16x256xf32>
    %c5 = arith.constant 5 : index
    %c0_53 = arith.constant 0 : index
    %c0_54 = arith.constant 0 : index
    %85 = vector.load %arg2[%c5, %c0_53, %c0_54] : memref<9x16x16xf32, #tpu.memory_space<vmem>>, vector<1x16x16xf32>
    %86 = vector.shape_cast %85 : vector<1x16x16xf32> to vector<16x16xf32>
    %cst_55 = arith.constant dense<0.000000e+00> : vector<16x256xf32>
    %87 = tpu.matmul %86, %84, %cst_55 {dimension_numbers = #tpu.dot_dimension_numbers<[1], [0], [0], [1], [0, 0, 1, 1], [], []>} : vector<16x16xf32>, vector<16x256xf32>, vector<16x256xf32> -> vector<16x256xf32>
    %88 = arith.addf %83, %87 : vector<16x256xf32>
    %c0_56 = arith.constant 0 : index
    %c162 = arith.constant 162 : index
    %89 = vector.load %arg7[%c0_56, %c162] : memref<16x512xf32, #tpu.memory_space<vmem>>, vector<16x256xf32>
    %c8 = arith.constant 8 : index
    %c0_57 = arith.constant 0 : index
    %c0_58 = arith.constant 0 : index
    %90 = vector.load %arg2[%c8, %c0_57, %c0_58] : memref<9x16x16xf32, #tpu.memory_space<vmem>>, vector<1x16x16xf32>
    %91 = vector.shape_cast %90 : vector<1x16x16xf32> to vector<16x16xf32>
    %cst_59 = arith.constant dense<0.000000e+00> : vector<16x256xf32>
    %92 = tpu.matmul %91, %89, %cst_59 {dimension_numbers = #tpu.dot_dimension_numbers<[1], [0], [0], [1], [0, 0, 1, 1], [], []>} : vector<16x16xf32>, vector<16x256xf32>, vector<16x256xf32> -> vector<16x256xf32>
    %93 = arith.addf %88, %92 : vector<16x256xf32>
    %c2_i32 = arith.constant 2 : i32
    %94 = vector.broadcast %c2_i32 : i32 to vector<1x256xi32>
    %95 = arith.addi %29, %94 : vector<1x256xi32>
    %c0_i32_60 = arith.constant 0 : i32
    %96 = vector.broadcast %c0_i32_60 : i32 to vector<1x256xi32>
    %97 = arith.cmpi sge, %95, %96 : vector<1x256xi32>
    %c2_i32_61 = arith.constant 2 : i32
    %98 = vector.broadcast %c2_i32_61 : i32 to vector<1x256xi32>
    %99 = arith.addi %29, %98 : vector<1x256xi32>
    %c16_i32_62 = arith.constant 16 : i32
    %100 = vector.broadcast %c16_i32_62 : i32 to vector<1x256xi32>
    %101 = arith.cmpi slt, %99, %100 : vector<1x256xi32>
    %102 = arith.andi %97, %101 : vector<1x256xi1>
    %cst_63 = arith.constant 0.000000e+00 : f32
    %103 = vector.shape_cast %102 : vector<1x256xi1> to vector<1x256xi1>
    %104 = vector.broadcast %103 : vector<1x256xi1> to vector<16x256xi1>
    %105 = vector.broadcast %cst_63 : f32 to vector<16x256xf32>
    %106 = arith.select %104, %93, %105 : vector<16x256xi1>, vector<16x256xf32>
    %107 = arith.addf %77, %106 : vector<16x256xf32>
    %cst_64 = arith.constant 0.000000e+00 : f32
    %108 = vector.broadcast %cst_64 : f32 to vector<16x256xf32>
    %109 = arith.cmpf oge, %107, %108 : vector<16x256xf32>
    %c0_65 = arith.constant 0 : index
    %c0_66 = arith.constant 0 : index
    %110 = vector.load %arg5[%c0_65, %c0_66] : memref<16x1xf32, #tpu.memory_space<vmem>>, vector<16x1xf32>
    %111 = vector.broadcast %110 : vector<16x1xf32> to vector<16x256xf32>
    %112 = arith.mulf %111, %107 : vector<16x256xf32>
    %113 = arith.select %109, %107, %112 : vector<16x256xi1>, vector<16x256xf32>
    %114 = arith.addf %1, %113 : vector<16x256xf32>
    %c0_67 = arith.constant 0 : index
    %c0_68 = arith.constant 0 : index
    %c0_69 = arith.constant 0 : index
    %115 = vector.load %arg6[%c0_67, %c0_68, %c0_69] : memref<1x16x256xf32, #tpu.memory_space<vmem>>, vector<1x16x256xf32>
    %116 = vector.shape_cast %115 : vector<1x16x256xf32> to vector<16x256xf32>
    %117 = vector.shape_cast %114 : vector<16x256xf32> to vector<1x16x256xf32>
    tpu.vector_store %arg6[%c0_67, %c0_68, %c0_69], %117 {strides = array<i32>} : memref<1x16x256xf32, #tpu.memory_space<vmem>>, vector<1x16x256xf32>,
    return
  }
  func.func @transform_0(%arg0: i32) -> (i32, i32, i32) {
    %c0_i32 = arith.constant 0 : i32
    %c0_i32_0 = arith.constant 0 : i32
    %c0_i32_1 = arith.constant 0 : i32
    return %arg0, %c0_i32, %c0_i32_0 : i32, i32, i32
  }
  func.func @transform_1(%arg0: i32) -> (i32, i32, i32) {
    %c0_i32 = arith.constant 0 : i32
    %c0_i32_0 = arith.constant 0 : i32
    %c0_i32_1 = arith.constant 0 : i32
    %c0_i32_2 = arith.constant 0 : i32
    return %c0_i32, %c0_i32_0, %c0_i32_1 : i32, i32, i32
  }
  func.func @transform_2(%arg0: i32) -> (i32, i32) {
    %c0_i32 = arith.constant 0 : i32
    %c0_i32_0 = arith.constant 0 : i32
    %c0_i32_1 = arith.constant 0 : i32
    return %c0_i32, %c0_i32_0 : i32, i32
  }
  func.func @transform_3(%arg0: i32) -> (i32, i32) {
    %c0_i32 = arith.constant 0 : i32
    %c0_i32_0 = arith.constant 0 : i32
    %c0_i32_1 = arith.constant 0 : i32
    return %c0_i32, %c0_i32_0 : i32, i32
  }
  func.func @transform_4(%arg0: i32) -> (i32, i32) {
    %c0_i32 = arith.constant 0 : i32
    %c0_i32_0 = arith.constant 0 : i32
    %c0_i32_1 = arith.constant 0 : i32
    return %c0_i32, %c0_i32_0 : i32, i32
  }
  func.func @transform_5(%arg0: i32) -> (i32, i32, i32) {
    %c0_i32 = arith.constant 0 : i32
    %c0_i32_0 = arith.constant 0 : i32
    %c0_i32_1 = arith.constant 0 : i32
    return %arg0, %c0_i32, %c0_i32_0 : i32, i32, i32
  }
}

</mosaic_0001>

<bundles_post_ra>
// kernel: tpu_custom_call.1
= control target key start
LH: loop header
LB: loop body
LE: loop exit
PB: predicated region body
PF: predicated region fallthrough
CT: control target
= control target key end

     0   :  { %10 = vsyncpa [#allocation4], 0  ;;  %s2302_s0 = inlined_call_operand.hbm [shape: f32[2,16,256], index: 0, kind: input, shape index: {}]   ;;  %s2303_s1 = inlined_call_operand.hbm [shape: f32[9,16,16], index: 1, kind: input, shape index: {}]   ;;  %s2304_s2 = inlined_call_operand.vmem [shape: f32[16,1], index: 2, kind: input, shape index: {}]   ;;  %s2305_s3 = inlined_call_operand.vmem [shape: f32[16,1], index: 3, kind: input, shape index: {}]   ;;  %s2306_s4 = inlined_call_operand.vmem [shape: f32[16,1], index: 4, kind: input, shape index: {}]   ;;  %s2307_s5 = inlined_call_operand.hbm [shape: f32[2,16,256], index: 5, kind: output, shape index: {}]  }
   0x1   :  { %12 = vsyncpa [#allocation4 + $0x1], 0 }
   0x2   :  { %13 = vsyncpa [#allocation7], 0 }
   0x3   :  { %14 = vsyncpa [#allocation5], 0 }
   0x4   :  { %16 = vsyncpa [#allocation5 + $0x1], 0  ;;  %s1952_s18 = smov 0   ;;  %s1954_s19 = smov 0  }
   0x5   :  { %s1956_s20 = smov 0   ;;  %s1958_s21 = smov 0  }
   0x6 LB: > { %s1973_s22 = sadd.s32 4294967295, %s1901_s21   ;;  %s1480_s23 = sadd.s32 4294967294, %s1901_s21   ;;  %s1901_s21 = sphi %s1958_s21, %s2327_s21   ;;  %s1897_s20 = sphi %s1956_s20, %s2326_s20   ;;  %s1893_s19 = sphi %s1954_s19, %s2325_s19   ;;  %s1889_s18 = sphi %s1952_s18, %s2324_s18  }
   0x7   : > { %p42_p0 = scmp.ne.s32.totalorder %s1893_s19, %s1889_s18  ;;  %p2308_p1 = scmp.eq.s32.totalorder %s1973_s22, 0 }
   0x8   : > { %p156_p3 = scmp.eq.s32.totalorder %s1480_s23, 1  ;;  %p1481_p5 = scmp.ge.s32.totalorder %s1901_s21, 1 }
   0x9   : > { %p1982_p4 = por %p2308_p1, %p42_p0  ;;  %p163_p7 = scmp.lt.s32.totalorder %s1901_s21, 3 }
   0xa   : > { %p1987_p6 = por %p156_p3, %p42_p0  ;;  %s1903_s27 = smov [#allocation6]  }
   0xb   : > { %s2311_s24 = scalar_select %p1982_p4, 1, 0 }
   0xc   : > { %s2312_s25 = scalar_select %p1987_p6, 1, 0 }
   0xd   : > { %p1992_p8 = pnand %p1481_p5, %p163_p7  ;;  %s175_s28 = sshll.u32 %s1903_s27, 4  ;;  %s1996_s28 = int_to_ptr.vmem [resolvable:$true] %s175_s28 }
   0xe   : > { %s2008_s30 = sadd.s32 1, %s1901_s21   ;;  %s29_s6 = sadd.s32 1, %s1897_s20 }
   0xf   : > { %s2313_s26 = scalar_select %p1992_p8, 1, 0 }
  0x10   : > { %p1586_p9 = pneg %p1992_p8  ;;  %s26_s7 = ssub.s32 %s1901_s21, %s2008_s30 }
  0x11   : > { %s1773_s10 = scalar_lea.hbm %s2303_s1, 2304 }
  0x12   : > { %p2003_p11 = pnand %p1586_p9, %p2308_p1  ;;  %p1774_p12 = scmp.ne.s32.totalorder %s2303_s1, %s1773_s10 }
  0x13   : > { %p1780_p5 = scmp.lt.u32.totalorder %s1773_s10, %s2303_s1 }
  0x14   : > { %p1775_p13 = pneg %p2003_p11 }
  0x16   : > { %p1776_p0 = pnand %p1775_p13, %p1774_p12 }
  0x18   : > { %p1777_p3 = pneg %p1776_p0 }
  0x1a   : > { %p1782_p7 = pnand %p1780_p5, %p1777_p3 }
  0x1c   : > { %1785 = shalt.err (!%p1782_p7)
}
  0x1d   : > { %s1786_s15 = scalar_lea.vmem %s1996_s28, 2304  ;;  %p1794_p2 = scmp.lt.s32.totalorder %s1996_s28, %s1996_s28 }
  0x1e   : > { %p1787_p9 = scmp.ne.s32.totalorder %s1996_s28, %s1786_s15  ;;  %p1795_p6 = scmp.lt.s32.totalorder %s1786_s15, %s1786_s15 }
  0x20   : > { %p1789_p10 = pnand %p1787_p9, %p1775_p13  ;;  %p1796_p4 = por %p1795_p6, %p1794_p2 }
  0x22   : > { %p1790_p1 = pneg %p1789_p10 }
  0x24   : > { %p1797_p8 = pnand %p1796_p4, %p1790_p1 }
  0x26   : > { %1800 = shalt.err (!%p1797_p8)
}
  0x27   : > { %s1904_s16 = smov 128   ;;  %s1905_s17 = smov 8  }
  0x28   : > { %1589 = dma.hbm_to_vmem [thread:$0]  (!%p2003_p11), %s2303_s1, 2304, %s1996_s28, [#allocation7], %s1904_s16, %s1904_s16, %s1905_s17  }
  0x29   : > { %p27_p2 = scmp.eq.s32.totalorder %s26_s7, 0  ;;  %p36_p1 = scmp.ne.s32.totalorder %s1897_s20, %s1893_s19 }
  0x2a   : > { %p37_p4 = scmp.eq.s32.totalorder %s1901_s21, 0  ;;  %p1599_p6 = scmp.lt.s32.totalorder %s1901_s21, 2 }
  0x2b   : > { %s2039_s8 = scalar_select %p27_p2, %s1897_s20, %s29_s6  }
  0x2c   : > { %p38_p8 = por %p37_p4, %p36_p1  ;;  %p2315_p10 = scmp.eq.s32.totalorder %s1973_s22, 1 }
  0x2d   : > { %s198_s10 = sand.u32 1, %s1897_s20   ;;  %s1514_s11 = sshll.u32 %s1901_s21, 9 }
  0x2e   : > { %p2043_p12 = por %p2315_p10, %p36_p1  ;;  %s1484_s12 = sshll.u32 %s198_s10, 5 }
  0x2f   : > { %s2052_s14 = scalar_lea.hbm %s2302_s0, %s1514_s11  ;;  %s202_s28 = scalar_lea.vmem [#allocation3], %s1484_s12 }
  0x30   : > { %s209_s6 = sshll.u32 %s202_s28, 4  ;;  %p2054_p11 = pnand %p1599_p6, %p38_p8  ;;  %s2058_s6 = int_to_ptr.vmem [resolvable:$true] %s209_s6 }
  0x31   : > { %s2060_s15 = scalar_lea.sflag [#allocation4], %s198_s10  ;;  %s1801_s16 = scalar_lea.hbm %s2052_s14, 512 }
  0x32   : > { %p1802_p13 = scmp.ne.s32.totalorder %s2052_s14, %s1801_s16  ;;  %p1803_p0 = pneg %p2054_p11 }
  0x33   : > { %s1806_s27 = scalar_lea.hbm %s2302_s0, 1024  ;;  %p1807_p7 = scmp.lt.u32.totalorder %s2052_s14, %s2302_s0 }
  0x34   : > { %p1804_p3 = pnand %p1803_p0, %p1802_p13  ;;  %p1808_p9 = scmp.lt.u32.totalorder %s1806_s27, %s1801_s16 }
  0x35   : > { %p1810_p1 = scmp.lt.u32.totalorder %s1801_s16, %s2052_s14 }
  0x36   : > { %p1805_p5 = pneg %p1804_p3  ;;  %p1809_p2 = por %p1808_p9, %p1807_p7 }
  0x38   : > { %p1811_p4 = por %p1810_p1, %p1809_p2 }
  0x3a   : > { %p1812_p6 = pnand %p1811_p4, %p1805_p5 }
  0x3c   : > { %1815 = shalt.err (!%p1812_p6)
}
  0x3d   : > { %s1816_s10 = scalar_lea.vmem %s2058_s6, 512  ;;  %s1906_s29 = smov [#allocation3]  }
  0x3e   : > { %p1817_p8 = scmp.ne.s32.totalorder %s2058_s6, %s1816_s10  ;;  %s1821_s13 = sshll.u32 %s1906_s29, 4  ;;  %s1822_s13 = int_to_ptr.vmem [resolvable:$false] %s1821_s13 }
  0x3f   : > { %s1823_s28 = scalar_lea.vmem %s1822_s13, 1024  ;;  %p1824_p3 = scmp.lt.s32.totalorder %s2058_s6, %s1822_s13 }
  0x40   : > { %p1819_p10 = pnand %p1817_p8, %p1803_p0  ;;  %p1825_p7 = scmp.lt.s32.totalorder %s1823_s28, %s1816_s10 }
  0x42   : > { %p1820_p13 = pneg %p1819_p10  ;;  %p1826_p9 = por %p1825_p7, %p1824_p3 }
  0x44   : > { %p1827_p2 = pnand %p1826_p9, %p1820_p13 }
  0x46   : > { %1830 = shalt.err (!%p1827_p2)
}
  0x47   : > { %s1907_s16 = smov 256   ;;  %s1908_s17 = smov 16  }
  0x48   : > { %1593 = dma.hbm_to_vmem [thread:$0]  (!%p2054_p11), %s2052_s14, 512, %s2058_s6, %s2060_s15, %s1907_s16, %s1907_s16, %s1908_s17  }
  0x49   : > { %p2318_p0 = scmp.ne.s32.totalorder %s2313_s26, 0 }
  0x4a   : > { %s2091_s23 = sand.u32 (!%p2318_p0), 1, %s1893_s19   ;;  %p2319_p5 = scmp.ne.s32.totalorder (!%p2318_p0), %s2311_s24, 0 }
  0x4b   : > { %221 = sbr.rel (%p2318_p0) target bundleno = 630 (0x276), region = 40  ;;  %s1488_s27 = sshll.u32 (!%p2318_p0), %s2091_s23, 5 }
  0x4c   : > { %s224_s11 = scalar_lea.sflag (!%p2318_p0), [#allocation4], %s2091_s23  ;;  %s2097_s12 = scalar_lea.vmem (!%p2318_p0), [#allocation3], %s1488_s27 }
  0x52   : > { %1876 = dma.done.wait (%p2319_p5), %s224_s11, 512  }
  0x53   : > { %1878 = vsyncadd (%p2319_p5), %s224_s11, 4294966784  ;;  %p2320_p11 = scmp.eq.s32.totalorder %s1973_s22, 0 }
  0x55   : > { %1880 = dma.done.wait (%p2320_p11), [#allocation7], 2304   ;;  %p2321_p1 = pmov %p2320_p11 }
  0x56   : > { %v1909_v0 = vmov 0   ;;  %v1910_v1 = vmov 0.0   ;;  %v282_v2 = vld [vmem:[%s2305_s3] sm:$0xff]  ;;  %v283_v4 = vld [vmem:[%s2305_s3 + $0x8] sm:$0xff]  ;;  %s1911_s13 = smov 2   ;;  %s1912_s28 = smov 34  }
  0x57   : > { %1882 = vsyncadd (%p2321_p1), [#allocation7], 4294964992  ;;  %1652 = vset.pattern.permute.xlu1 %v1909_v0  ;;  %1651 = vset.pattern.permute.xlu0 %v1909_v0  ;;  %v266_v3 = vld [vmem:[%s2304_s2] sm:$0xff]  ;;  %v267_v5 = vld [vmem:[%s2304_s2 + $0x8] sm:$0xff]  ;;  %s1913_s16 = smov 32   ;;  %s1914_s17 = smov 98  }
  0x58   : > { %438 = vmatprep.mubr.f32.mxu1 %v1910_v1  ;;  %542 = vmatprep.mubr.f32.mxu0 %v1910_v1  ;;  %v2126_v6 = vld [vmem:[%s2097_s12] sm:$0xff]  ;;  %v2129_v7 = vld [vmem:[%s2097_s12 + $0x8] sm:$0xff]  ;;  %v2134_v12 = vld [vmem:[%s2097_s12 + $0x10] sm:$0xff]  ;;  %s1915_s11 = smov 30   ;;  %s1917_s26 = smov 96   ;;  %vm358_vm0 = vcmask 15360  }
  0x59   : > { %286 = vperm.xlu1 %1652, %v282_v2   ;;  %270 = vperm.xlu0 %1651, %v266_v3   ;;  %v2137_v13 = vld [vmem:[%s2097_s12 + $0x18] sm:$0xff]  ;;  %s1916_s12 = smov 126   ;;  %s1918_s14 = smov 94   ;;  %v1355_v29 = vld [vmem:[%s2306_s4] sm:$0xff]  ;;  %v1356_v30 = vld [vmem:[%s2306_s4 + $0x8] sm:$0xff]  ;;  %vm463_vm1 = vcmask 277504  }
  0x5a   : > { %vm367_vm2 = vcmask 130048   ;;  %v338_v57 = vld [vmem:[#allocation6 + $0x30] sm:$0xff]  ;;  %vm582_vm3 = vcmask 801792   ;;  %vm1024_vm4 = vcmask 1031168   ;;  %vm799_vm5 = vcmask 261120   ;;  %s257_s10 = scalar_lea.vmem [#allocation8], %s1488_s27 }
  0x5b   : > { %vm1128_vm6 = vcmask 244736   ;;  %vm906_vm7 = vcmask 785408   ;;  %vm1235_vm8 = vcmask 769024   ;;  %s1397_s29 = sshll.u32 %s257_s10, 4  ;;  %s2251_s29 = int_to_ptr.vmem [resolvable:$true] %s1397_s29 }
  0x5d   : > { %291 = vperm.xlu1 %1652, %v283_v4   ;;  %275 = vperm.xlu0 %1651, %v267_v5  }
  0x61   : > { %1654 = vrot.lane.b32.xlu0 %v1910_v1, %s1911_s13  ;;  %1659 = vrot.lane.b32.xlu1 %v1910_v1, %s1912_s28 }
  0x65   : > { %1664 = vrot.lane.b32.xlu0 %v1910_v1, %s1913_s16 }
  0xd8   : > { %v287_v8 = vpop.permute.xlu1 %286  ;;  %v271_v9 = vpop.permute.xlu0 %270 }
  0xd9   : > { %v278_v10 = vmul.f32 %v271_v9, %v2126_v6  ;;  %v279_v11 = vmul.f32 %v271_v9, %v2129_v7  ;;  %v335_v9 = vld [vmem:[#allocation6] sm:$0xff] }
  0xdb   : > { %v2139_v14 = vadd.f32 %v287_v8, %v278_v10  ;;  %v2141_v15 = vadd.f32 %v287_v8, %v279_v11  ;;  %v339_v8 = vld [vmem:[#allocation6 + $0x38] sm:$0xff] }
  0xdc   : > { %v276_v16 = vpop.permute.xlu0 %275  ;;  %v292_v20 = vpop.permute.xlu1 %291 }
  0xdd   : > { %v280_v17 = vmul.f32 %v276_v16, %v2134_v12  ;;  %v281_v18 = vmul.f32 %v276_v16, %v2137_v13  ;;  %v1668_v19 = vpack.i.bf16 %v2141_v15, %v2139_v14  ;;  %v1693_v24 = vpack.i.bf16 %v1910_v1, %v2141_v15 }
  0xdf   : > { %v2147_v21 = vadd.f32 %v292_v20, %v280_v17  ;;  %v2149_v22 = vadd.f32 %v292_v20, %v281_v18  ;;  %1669 = vrot.lane.b32.xlu0 %v1668_v19, %s1911_s13 }
  0xe0   : > { %v1655_v31 = vpop.permute.xlu0 %1654  ;;  %v1660_v33 = vpop.permute.xlu1 %1659 }
  0xe1   : > { %v1673_v23 = vpack.i.bf16 %v2149_v22, %v2147_v21  ;;  %v1528_v25 = vpack.c.bf16 %v2149_v22, %v2141_v15  ;;  %v1530_v26 = vpack.c.bf16 %v2147_v21, %v2139_v14  ;;  %v1703_v27 = vpack.i.bf16 %v2147_v21, %v2139_v14 }
  0xe2   : > { %v1698_v28 = vpack.i.bf16 %v1910_v1, %v2149_v22  ;;  %v1656_v35 = vunpack.i.l.bf16 %v1655_v31  ;;  %v1657_v40 = vunpack.i.h.bf16 %v1655_v31  ;;  %v1662_v53 = vunpack.i.h.bf16 %v1660_v33 }
  0xe3   : > { %1674 = vrot.lane.b32.xlu1 %v1673_v23, %s1911_s13  ;;  %1689 = vrot.lane.b32.xlu0 %v1673_v23, %s1912_s28  ;;  %v1661_v54 = vunpack.i.l.bf16 %v1660_v33  ;;  %v336_v33 = vld [vmem:[#allocation6 + $0x8] sm:$0xff]  ;;  %s1515_s13 = sshll.u32 %s1973_s22, 9  ;;  %s1384_s22 = scalar_lea.sflag [#allocation5], %s2091_s23 }
  0xe4   : > { %v2172_v32 = vpop.permute.xlu0 %1664 }
  0xe7   : > { %1679 = vrot.lane.b32.xlu1 %v1668_v19, %s1912_s28  ;;  %1694 = vrot.lane.b32.xlu0 %v1693_v24, %s1914_s17 }
  0xeb   : > { %1684 = vrot.lane.b32.xlu1 %v1910_v1, %s1915_s11  ;;  %1704 = vrot.lane.b32.xlu0 %v1703_v27, %s1914_s17 }
  0xef   : > { %1699 = vrot.lane.b32.xlu1 %v1698_v28, %s1914_s17  ;;  %1714 = vrot.lane.b32.xlu0 %v1698_v28, %s1916_s12  ;;  %s1831_s17 = scalar_lea.vmem %s2251_s29, 512 }
  0xf0   : > { %p1832_p4 = scmp.ne.s32.totalorder %s2251_s29, %s1831_s17 }
  0xf2   : > { %p1833_p6 = pnand %p1832_p4, %p2043_p12 }
  0xf3   : > { %1709 = vrot.lane.b32.xlu1 %v1693_v24, %s1916_s12  ;;  %1724 = vrot.lane.b32.xlu0 %v1668_v19, %s1913_s16 }
  0xf4   : > { %p1834_p8 = pneg %p1833_p6 }
  0xf7   : > { %1719 = vrot.lane.b32.xlu1 %v1703_v27, %s1916_s12  ;;  %1739 = vrot.lane.b32.xlu0 %v1673_v23, %s1915_s11 }
  0xfb   : > { %1729 = vrot.lane.b32.xlu1 %v1673_v23, %s1913_s16  ;;  %1744 = vrot.lane.b32.xlu0 %v1693_v24, %s1917_s26  ;;  %s2257_s16 = scalar_lea.hbm %s2307_s5, %s1515_s13 }
  0xff   : > { %1734 = vrot.lane.b32.xlu1 %v1668_v19, %s1915_s11  ;;  %1754 = vrot.lane.b32.xlu0 %v1703_v27, %s1917_s26  ;;  %s1919_s11 = smov [#allocation8]  }
 0x100   : > { %s1835_s12 = sshll.u32 %s1919_s11, 4  ;;  %s1836_s12 = int_to_ptr.vmem [resolvable:$false] %s1835_s12 }
 0x101   : > { %p1838_p10 = scmp.lt.s32.totalorder %s2251_s29, %s1836_s12 }
 0x103   : > { %1749 = vrot.lane.b32.xlu1 %v1698_v28, %s1917_s26  ;;  %1764 = vrot.lane.b32.xlu0 %v1698_v28, %s1918_s14  ;;  %s1837_s26 = scalar_lea.vmem %s1836_s12, 1024 }
 0x104   : > { %p1839_p13 = scmp.lt.s32.totalorder %s1837_s26, %s1831_s17 }
 0x106   : > { %p1840_p3 = por %p1839_p13, %p1838_p10 }
 0x107   : > { %1759 = vrot.lane.b32.xlu1 %v1693_v24, %s1918_s14  ;;  %1359 = vperm.xlu0 %1651, %v1355_v29  }
 0x108   : > { %p1841_p7 = pnand %p1840_p3, %p1834_p8 }
 0x10b   : > { %1769 = vrot.lane.b32.xlu1 %v1703_v27, %s1918_s14 }
 0x10f   : > { %1364 = vperm.xlu1 %1652, %v1356_v30  }
 0x151   : > { %v1670_v34 = vpop.permute.xlu0 %1669 }
 0x152   : > { %v1672_v36 = vunpack.i.h.bf16 %v1670_v34  ;;  %v1671_v37 = vunpack.i.l.bf16 %v1670_v34  ;;  %v562_v34 = vld [vmem:[#allocation6 + $0x60] sm:$0xff] }
 0x154   : > { %v360_v43 = vsel %vm358_vm0, %v1671_v37, %v1672_v36  ;;  %v359_v44 = vsel %vm358_vm0, %v1656_v35, %v1671_v37 }
 0x155   : > { %v1675_v38 = vpop.permute.xlu1 %1674  ;;  %v1690_v39 = vpop.permute.xlu0 %1689 }
 0x156   : > { %v1677_v41 = vunpack.i.h.bf16 %v1675_v38  ;;  %v1676_v42 = vunpack.i.l.bf16 %v1675_v38  ;;  %v1692_v45 = vunpack.i.h.bf16 %v1690_v39  ;;  %v1691_v46 = vunpack.i.l.bf16 %v1690_v39 }
 0x158   : > { %v362_v47 = vsel %vm358_vm0, %v1676_v42, %v1677_v41  ;;  %v361_v48 = vsel %vm358_vm0, %v1657_v40, %v1676_v42  ;;  %v467_v59 = vsel %vm463_vm1, %v1691_v46, %v1692_v45  ;;  %v466_v61 = vsel %vm463_vm1, %v1662_v53, %v1691_v46  ;;  %v563_v46 = vld [vmem:[#allocation6 + $0x68] sm:$0xff] }
 0x159   : > { %v1680_v49 = vpop.permute.xlu1 %1679  ;;  %v1695_v50 = vpop.permute.xlu0 %1694  ;;  %v1516_v51 = vpack.c.bf16 %v362_v47, %v360_v43  ;;  %v1518_v52 = vpack.c.bf16 %v361_v48, %v359_v44  ;;  %v702_v47 = vld [vmem:[#allocation6 + $0x40] sm:$0xff]  ;;  %v1666_v48 = vunpack.i.l.bf16 %v2172_v32 }
 0x15a   : > { %v1682_v55 = vunpack.i.h.bf16 %v1680_v49  ;;  %v1681_v56 = vunpack.i.l.bf16 %v1680_v49  ;;  %v1697_v3 = vunpack.i.h.bf16 %v1695_v50  ;;  %v1696_v4 = vunpack.i.l.bf16 %v1695_v50 }
 0x15b   : > { %1517 = vmatprep.subr.bf16.mxu1 %v1516_v51 }
 0x15c   : > { %1519 = vmatpush1.bf16.msra.mxu1 %v1518_v52  ;;  %v465_v58 = vsel %vm463_vm1, %v1681_v56, %v1682_v55  ;;  %v464_v60 = vsel %vm463_vm1, %v1661_v54, %v1681_v56  ;;  %v584_v20 = vsel %vm582_vm3, %v1696_v4, %v1697_v3  ;;  %v1667_v52 = vunpack.i.h.bf16 %v2172_v32  ;;  %v703_v56 = vld [vmem:[#allocation6 + $0x48] sm:$0xff] }
 0x15d   : > { %v2174_v62 = vpop.permute.xlu1 %1684  ;;  %v1705_v63 = vpop.permute.xlu0 %1704  ;;  %v1520_v0 = vpack.c.bf16 %v467_v59, %v465_v58  ;;  %v1522_v2 = vpack.c.bf16 %v466_v61, %v464_v60 }
 0x15e   : > { %v1706_v5 = vunpack.i.l.bf16 %v1705_v63  ;;  %v1707_v16 = vunpack.i.h.bf16 %v1705_v63  ;;  %v1687_v58 = vunpack.i.h.bf16 %v2174_v62 }
 0x15f   : > { %1491 = vmatmul.mubr.msk.f32.vlgmr.msra.gmra.mrb[0].mxu1 %vm367_vm2, %v338_v57  ;;  %1521 = vmatprep.subr.bf16.mxu0 %v1520_v0 }
 0x160   : > { %1552 = vmatprep.subr.bf16.mxu1 %v1520_v0  ;;  %1523 = vmatpush1.bf16.msra.mxu0 %v1522_v2  ;;  %v583_v19 = vsel %vm582_vm3, %v1706_v5, %v1696_v4  ;;  %v1686_v0 = vunpack.i.l.bf16 %v2174_v62  ;;  %v1010_v4 = vld [vmem:[#allocation6 + $0x50] sm:$0xff] }
 0x161   : > { %1553 = vmatpush1.bf16.msra.mxu1 %v1522_v2  ;;  %v1700_v10 = vpop.permute.xlu1 %1699  ;;  %v1715_v11 = vpop.permute.xlu0 %1714  ;;  %444 = vmatprep.mubr.f32.mxu1 %v1910_v1 }
 0x162   : > { %v1702_v17 = vunpack.i.h.bf16 %v1700_v10  ;;  %v1701_v18 = vunpack.i.l.bf16 %v1700_v10  ;;  %1529 = vmatprep.subr.bf16.mxu1 %v1528_v25  ;;  %v1717_v24 = vunpack.i.h.bf16 %v1715_v11  ;;  %v1716_v27 = vunpack.i.l.bf16 %v1715_v11 }
 0x163   : > { %1492 = vmatmul.mubr.msk.f32.gmra.mrb[2].mxu1 %vm367_vm2, %v339_v8  ;;  %1493 = vmatmul.mubr.msk.f32.vlgmr.msra.gmra.mrb[0].mxu0 %vm367_vm2, %v335_v9 }
 0x164   : > { %v585_v23 = vsel %vm582_vm3, %v1707_v16, %v1701_v18  ;;  %v586_v28 = vsel %vm582_vm3, %v1701_v18, %v1702_v17  ;;  %548 = vmatprep.mubr.f32.mxu1 %v1910_v1  ;;  %661 = vmatprep.mubr.f32.mxu0 %v1910_v1  ;;  %v1028_v36 = vsel %vm1024_vm4, %v1716_v27, %v1717_v24  ;;  %v699_v16 = vld [vmem:[#allocation6 + $0x10] sm:$0xff] }
 0x165   : > { %v1526_v15 = vpack.c.bf16 %v585_v23, %v583_v19  ;;  %v1710_v22 = vpop.permute.xlu1 %1709  ;;  %v1725_v25 = vpop.permute.xlu0 %1724  ;;  %v1524_v29 = vpack.c.bf16 %v586_v28, %v584_v20 }
 0x166   : > { %v1712_v30 = vunpack.i.h.bf16 %v1710_v22  ;;  %v1711_v31 = vunpack.i.l.bf16 %v1710_v22  ;;  %v1726_v42 = vunpack.i.l.bf16 %v1725_v25  ;;  %v1727_v43 = vunpack.i.h.bf16 %v1725_v25 }
 0x167   : > { %1525 = vmatprep.subr.bf16.mxu0 %v1524_v29 }
 0x168   : > { %1527 = vmatpush1.bf16.msra.mxu0 %v1526_v15  ;;  %v1026_v35 = vsel %vm1024_vm4, %v1711_v31, %v1712_v30  ;;  %v800_v55 = vsel %vm799_vm5, %v1666_v48, %v1726_v42  ;;  %v801_v57 = vsel %vm799_vm5, %v1726_v42, %v1727_v43  ;;  %v1011_v15 = vld [vmem:[#allocation6 + $0x58] sm:$0xff]  ;;  %v1008_v48 = vld [vmem:[#allocation6 + $0x28] sm:$0xff] }
 0x169   : > { %v1720_v37 = vpop.permute.xlu1 %1719  ;;  %v1740_v38 = vpop.permute.xlu0 %1739  ;;  %v1540_v39 = vpack.c.bf16 %v1028_v36, %v1026_v35 }
 0x16a   : > { %v1722_v40 = vunpack.i.h.bf16 %v1720_v37  ;;  %v1721_v41 = vunpack.i.l.bf16 %v1720_v37  ;;  %v1741_v14 = vunpack.i.l.bf16 %v1740_v38  ;;  %v1742_v21 = vunpack.i.h.bf16 %v1740_v38 }
 0x16b   : > { %1494 = vmatmul.mubr.msk.f32.vlgmr.msra.gmra.mrb[2].mxu1 %vm367_vm2, %v336_v33  ;;  %1495 = vmatmul.mubr.msk.f32.vlgmr.msra.gmra.mrb[0].mxu0 %vm367_vm2, %v562_v34  ;;  %v700_v33 = vld [vmem:[#allocation6 + $0x18] sm:$0xff] }
 0x16c   : > { %v1025_v44 = vsel %vm1024_vm4, %v1721_v41, %v1711_v31  ;;  %v1027_v45 = vsel %vm1024_vm4, %v1722_v40, %v1716_v27  ;;  %1531 = vmatpush1.bf16.msra.mxu1 %v1530_v26  ;;  %1541 = vmatprep.subr.bf16.mxu0 %v1540_v39  ;;  %v1131_v5 = vsel %vm1128_vm6, %v1687_v58, %v1741_v14  ;;  %v1007_v40 = vld [vmem:[#allocation6 + $0x20] sm:$0xff]  ;;  %v892_v41 = vld [vmem:[#allocation6 + $0x70] sm:$0xff] }
 0x16d   : > { %v1542_v49 = vpack.c.bf16 %v1027_v45, %v1025_v44  ;;  %v1730_v50 = vpop.permute.xlu1 %1729  ;;  %v1745_v51 = vpop.permute.xlu0 %1744  ;;  %667 = vmatprep.mubr.f32.mxu0 %v1910_v1  ;;  %774 = vmatprep.mubr.f32.mxu1 %v1910_v1  ;;  %v1132_v17 = vsel %vm1128_vm6, %v1741_v14, %v1742_v21  ;;  %v302_v21 = vlaneseq }
 0x16e   : > { %v1732_v53 = vunpack.i.h.bf16 %v1730_v50  ;;  %v1731_v54 = vunpack.i.l.bf16 %v1730_v50  ;;  %v1747_v8 = vunpack.i.h.bf16 %v1745_v51  ;;  %v1746_v9 = vunpack.i.l.bf16 %v1745_v51  ;;  %v893_v51 = vld [vmem:[#allocation6 + $0x78] sm:$0xff] }
 0x16f   : > { %1496 = vmatmul.mubr.msk.f32.gmra.mrb[2].mxu0 %vm367_vm2, %v563_v46  ;;  %1497 = vmatmul.mubr.msk.f32.vlgmr.msra.gmra.mrb[4].mxu1 %vm367_vm2, %v702_v47 }
 0x170   : > { %v802_v26 = vsel %vm799_vm5, %v1667_v52, %v1731_v54  ;;  %1543 = vmatpush1.bf16.msra.mxu0 %v1542_v49  ;;  %780 = vmatprep.mubr.f32.mxu1 %v1910_v1  ;;  %v803_v32 = vsel %vm799_vm5, %v1731_v54, %v1732_v53  ;;  %v908_v25 = vsel %vm906_vm7, %v1746_v9, %v1747_v8  ;;  %v1221_v53 = vld [vmem:[#allocation6 + $0x80] sm:$0xff]  ;;  %v1222_v54 = vld [vmem:[#allocation6 + $0x88] sm:$0xff] }
 0x171   : > { %v1534_v59 = vpack.c.bf16 %v802_v26, %v800_v55  ;;  %v1735_v60 = vpop.permute.xlu1 %1734  ;;  %v1755_v61 = vpop.permute.xlu0 %1754  ;;  %v1532_v63 = vpack.c.bf16 %v803_v32, %v801_v57  ;;  %1103 = vmatprep.mubr.f32.mxu0 %v1910_v1 }
 0x172   : > { %v1737_v2 = vunpack.i.h.bf16 %v1735_v60  ;;  %v1736_v3 = vunpack.i.l.bf16 %v1735_v60  ;;  %v1756_v10 = vunpack.i.l.bf16 %v1755_v61  ;;  %v1757_v24 = vunpack.i.h.bf16 %v1755_v61 }
 0x173   : > { %1498 = vmatmul.mubr.msk.f32.gmra.mrb[6].mxu1 %vm367_vm2, %v703_v56  ;;  %1533 = vmatprep.subr.bf16.mxu1 %v1532_v63  ;;  %v303_v60 = vand.u32 127, %v302_v21 }
 0x174   : > { %v1129_v11 = vsel %vm1128_vm6, %v1686_v0, %v1736_v3  ;;  %1535 = vmatpush1.bf16.msra.mxu1 %v1534_v59  ;;  %878 = vmatprep.mubr.f32.mxu1 %v1910_v1  ;;  %v1130_v62 = vsel %vm1128_vm6, %v1736_v3, %v1737_v2  ;;  %v907_v22 = vsel %vm906_vm7, %v1756_v10, %v1746_v9 }
 0x175   : > { %v1546_v18 = vpack.c.bf16 %v1131_v5, %v1129_v11  ;;  %v1750_v19 = vpop.permute.xlu1 %1749  ;;  %v1765_v20 = vpop.permute.xlu0 %1764  ;;  %1503 = vmatmul.mubr.msk.f32.vlgmr.msra.gmra.mrb[4].mxu0 %vm367_vm2, %v1010_v4  ;;  %v1544_v23 = vpack.c.bf16 %v1132_v17, %v1130_v62  ;;  %v304_v3 = vadd.s32 128, %v303_v60  ;;  %v309_v4 = vand.u32 15, %v303_v60 }
 0x176   : > { %v1752_v27 = vunpack.i.h.bf16 %v1750_v19  ;;  %v1751_v28 = vunpack.i.l.bf16 %v1750_v19  ;;  %1109 = vmatprep.mubr.f32.mxu0 %v1910_v1  ;;  %v1767_v30 = vunpack.i.h.bf16 %v1765_v20  ;;  %v1766_v31 = vunpack.i.l.bf16 %v1765_v20 }
 0x177   : > { %1499 = vmatmul.mubr.msk.f32.vlgmr.msra.gmra.mrb[4].mxu1 %vm367_vm2, %v699_v16  ;;  %1545 = vmatprep.subr.bf16.mxu0 %v1544_v23  ;;  %v678_v5 = vadd.s32 4294967294, %v309_v4  ;;  %v1331_v17 = vadd.s32 2, %v309_v4 }
 0x178   : > { %v909_v29 = vsel %vm906_vm7, %v1757_v24, %v1751_v28  ;;  %1547 = vmatpush1.bf16.msra.mxu0 %v1546_v18  ;;  %884 = vmatprep.mubr.f32.mxu1 %v1910_v1  ;;  %v910_v34 = vsel %vm906_vm7, %v1751_v28, %v1752_v27  ;;  %v1239_v43 = vsel %vm1235_vm8, %v1766_v31, %v1767_v30 }
 0x179   : > { %v1538_v35 = vpack.c.bf16 %v909_v29, %v907_v22  ;;  %v1760_v36 = vpop.permute.xlu1 %1759  ;;  %1504 = vmatmul.mubr.msk.f32.gmra.mrb[6].mxu0 %vm367_vm2, %v1011_v15  ;;  %v1536_v37 = vpack.c.bf16 %v910_v34, %v908_v25  ;;  %vm680_vm9 = vcmp.ge.s32.totalorder %v678_v5, 0  ;;  %vm1335_vm11 = vcmp.lt.s32.totalorder %v1331_v17, 16 }
 0x17a   : > { %v1762_v38 = vunpack.i.h.bf16 %v1760_v36  ;;  %v1761_v39 = vunpack.i.l.bf16 %v1760_v36  ;;  %1207 = vmatprep.mubr.f32.mxu0 %v1910_v1 }
 0x17b   : > { %1500 = vmatmul.mubr.msk.f32.gmra.mrb[6].mxu1 %vm367_vm2, %v700_v33  ;;  %1537 = vmatprep.subr.bf16.mxu1 %v1536_v37 }
 0x17c   : > { %1539 = vmatpush1.bf16.msra.mxu1 %v1538_v35  ;;  %985 = vmatprep.mubr.f32.mxu1 %v1910_v1  ;;  %v1237_v42 = vsel %vm1235_vm8, %v1761_v39, %v1762_v38 }
 0x17d   : > { %v1770_v44 = vpop.permute.xlu1 %1769  ;;  %1505 = vmatmul.mubr.msk.f32.vlgmr.msra.gmra.mrb[4].mxu0 %vm367_vm2, %v1007_v40  ;;  %v1548_v45 = vpack.c.bf16 %v1239_v43, %v1237_v42 }
 0x17e   : > { %v1772_v46 = vunpack.i.h.bf16 %v1770_v44  ;;  %v1771_v47 = vunpack.i.l.bf16 %v1770_v44  ;;  %1213 = vmatprep.mubr.f32.mxu0 %v1910_v1 }
 0x17f   : > { %1501 = vmatmul.mubr.msk.f32.vlgmr.msra.gmra.mrb[4].mxu1 %vm367_vm2, %v892_v41  ;;  %1549 = vmatprep.subr.bf16.mxu0 %v1548_v45 }
 0x180   : > { %v1236_v49 = vsel %vm1235_vm8, %v1771_v47, %v1761_v39  ;;  %v1238_v50 = vsel %vm1235_vm8, %v1772_v46, %v1766_v31  ;;  %991 = vmatprep.mubr.f32.mxu1 %v1910_v1 }
 0x181   : > { %v1550_v52 = vpack.c.bf16 %v1238_v50, %v1236_v49  ;;  %1506 = vmatmul.mubr.msk.f32.gmra.mrb[6].mxu0 %vm367_vm2, %v1008_v48 }
 0x182   : > { %1314 = vmatprep.mubr.f32.mxu0 %v1910_v1 }
 0x183   : > { %1502 = vmatmul.mubr.msk.f32.gmra.mrb[6].mxu1 %vm367_vm2, %v893_v51  ;;  %1551 = vmatpush1.bf16.msra.mxu0 %v1550_v52 }
 0x186   : > { %1507 = vmatmul.mubr.msk.f32.vlgmr.msra.gmra.mrb[4].mxu0 %vm367_vm2, %v1221_v53  ;;  %v1360_v33 = vpop.permute.xlu0 %1359 }
 0x187   : > { %1320 = vmatprep.mubr.f32.mxu0 %v1910_v1  ;;  %v316_v1 = vand.u32 15, %v304_v3 }
 0x189   : > { %v679_v8 = vadd.s32 4294967294, %v316_v1  ;;  %v1332_v19 = vadd.s32 2, %v316_v1 }
 0x18a   : > { %1508 = vmatmul.mubr.msk.f32.gmra.mrb[6].mxu0 %vm367_vm2, %v1222_v54 }
 0x18b   : > { %vm681_vm10 = vcmp.ge.s32.totalorder %v679_v8, 0  ;;  %vm1336_vm12 = vcmp.lt.s32.totalorder %v1332_v19, 16 }
 0x18e   : > { %v1365_v43 = vpop.permute.xlu1 %1364 }
 0x232   : > { %v440_v55 = vpop.f32.mrb[0].mxu1 }
 0x233   : > { %v442_v14 = vpop.f32.mrb[1].mxu1 }
 0x23e   : > { %v663_v26 = vpop.f32.mrb[0].mxu0  ;;  %v550_v56 = vpop.f32.mrb[2].mxu1 }
 0x23f   : > { %v1554_v57 = vadd.f32 %v663_v26, %v440_v55  ;;  %v665_v32 = vpop.f32.mrb[1].mxu0  ;;  %v552_v58 = vpop.f32.mrb[3].mxu1 }
 0x240   : > { %v1555_v59 = vadd.f32 %v665_v32, %v442_v14 }
 0x241   : > { %v690_v9 = vsel %vm680_vm9, %v1554_v57, 0.0 }
 0x242   : > { %v669_v61 = vpop.f32.mrb[2].mxu0  ;;  %v691_v16 = vsel %vm681_vm10, %v1555_v59, 0.0 }
 0x243   : > { %v1556_v63 = vadd.f32 %v669_v61, %v550_v56  ;;  %v671_v0 = vpop.f32.mrb[3].mxu0 }
 0x244   : > { %v1557_v2 = vadd.f32 %v671_v0, %v552_v58 }
 0x245   : > { %v692_v20 = vsel %vm680_vm9, %v1556_v63, 0.0 }
 0x246   : > { %v693_v27 = vsel %vm681_vm10, %v1557_v2, 0.0 }
 0x252   : > { %v987_v10 = vpop.f32.mrb[4].mxu1 }
 0x253   : > { %v1002_v11 = vadd.f32 %v987_v10, %v690_v9  ;;  %v989_v62 = vpop.f32.mrb[5].mxu1 }
 0x254   : > { %v1003_v18 = vadd.f32 %v989_v62, %v691_v16 }
 0x256   : > { %v993_v23 = vpop.f32.mrb[6].mxu1 }
 0x257   : > { %v1004_v24 = vadd.f32 %v993_v23, %v692_v20  ;;  %v995_v28 = vpop.f32.mrb[7].mxu1 }
 0x258   : > { %v1005_v15 = vadd.f32 %v995_v28, %v693_v27 }
 0x259   : > { %v1316_v22 = vpop.f32.mrb[4].mxu0 }
 0x25a   : > { %v1343_v25 = vsel %vm1335_vm11, %v1316_v22, 0.0  ;;  %v1318_v29 = vpop.f32.mrb[5].mxu0 }
 0x25b   : > { %v1347_v30 = vadd.f32 %v1343_v25, %v1002_v11  ;;  %v1344_v31 = vsel %vm1336_vm12, %v1318_v29, 0.0 }
 0x25c   : > { %v1348_v34 = vadd.f32 %v1344_v31, %v1003_v18 }
 0x25d   : > { %vm1351_vm13 = vcmp.ge.f32.partialorder %v1347_v30, 0.0  ;;  %v1367_v35 = vmul.f32 %v1360_v33, %v1347_v30  ;;  %v1322_v36 = vpop.f32.mrb[6].mxu0 }
 0x25e   : > { %vm1352_vm14 = vcmp.ge.f32.partialorder %v1348_v34, 0.0  ;;  %v1368_v37 = vmul.f32 %v1360_v33, %v1348_v34  ;;  %v1345_v38 = vsel %vm1335_vm11, %v1322_v36, 0.0  ;;  %v1324_v39 = vpop.f32.mrb[7].mxu0 }
 0x25f   : > { %v1371_v40 = vsel %vm1351_vm13, %v1347_v30, %v1367_v35  ;;  %v1349_v41 = vadd.f32 %v1345_v38, %v1004_v24  ;;  %v1346_v42 = vsel %vm1336_vm12, %v1324_v39, 0.0 }
 0x260   : > { %v1375_v44 = vadd.f32 %v1371_v40, %v2126_v6  ;;  %v1372_v45 = vsel %vm1352_vm14, %v1348_v34, %v1368_v37  ;;  %v1350_v46 = vadd.f32 %v1346_v42, %v1005_v15 }
 0x261   : > { %v1376_v47 = vadd.f32 %v1372_v45, %v2129_v7  ;;  %vm1353_vm15 = vcmp.ge.f32.partialorder %v1349_v41, 0.0  ;;  %v1369_v48 = vmul.f32 %v1365_v43, %v1349_v41 }
 0x262   : > { %1379 = vst [vmem:[%s257_s10] sm:$0xff] %v1375_v44  ;;  %vm1354_vm0 = vcmp.ge.f32.partialorder %v1350_v46, 0.0  ;;  %v1370_v49 = vmul.f32 %v1365_v43, %v1350_v46 }
 0x263   : > { %1380 = vst [vmem:[%s257_s10 + $0x8] sm:$0xff] %v1376_v47  ;;  %v1373_v6 = vsel %vm1353_vm15, %v1349_v41, %v1369_v48 }
 0x264   : > { %v1377_v50 = vadd.f32 %v1373_v6, %v2134_v12  ;;  %v1374_v51 = vsel %vm1354_vm0, %v1350_v46, %v1370_v49 }
 0x265   : > { %v1378_v7 = vadd.f32 %v1374_v51, %v2137_v13 }
 0x266   : > { %1381 = vst [vmem:[%s257_s10 + $0x10] sm:$0xff] %v1377_v50 }
 0x267   : > { %1382 = vst [vmem:[%s257_s10 + $0x18] sm:$0xff] %v1378_v7 }
 0x268   : > { %1844 = shalt.err (!%p1841_p7)
}
 0x269   : > { %s1845_s14 = scalar_lea.hbm %s2257_s16, 512  ;;  %s1849_s7 = scalar_lea.hbm %s2307_s5, 1024 }
 0x26a   : > { %p1846_p9 = scmp.ne.s32.totalorder %s2257_s16, %s1845_s14  ;;  %p1850_p5 = scmp.lt.u32.totalorder %s2257_s16, %s2307_s5 }
 0x26b   : > { %p1851_p11 = scmp.lt.u32.totalorder %s1849_s7, %s1845_s14  ;;  %p1853_p4 = scmp.lt.u32.totalorder %s1845_s14, %s2257_s16 }
 0x26c   : > { %p1847_p2 = pnand %p1846_p9, %p2043_p12 }
 0x26d   : > { %p1852_p1 = por %p1851_p11, %p1850_p5 }
 0x26e   : > { %p1848_p0 = pneg %p1847_p2 }
 0x26f   : > { %p1854_p6 = por %p1853_p4, %p1852_p1 }
 0x271   : > { %p1855_p8 = pnand %p1854_p6, %p1848_p0 }
 0x273   : > { %1858 = shalt.err (!%p1855_p8)
}
 0x274   : > { %s1920_s13 = smov 256   ;;  %s1921_s27 = smov 16  }
 0x275   : > { %1584 = dma.vmem_to_hbm [thread:$0]  (%p2043_p12), %s2251_s29, 512, %s2257_s16, %s1384_s22, %s1920_s13, %s1920_s13, %s1921_s27  }
 0x276 PF: > { %s1412_s28 = sand.u32 1, %s1889_s18   ;;  %p2322_p10 = scmp.ne.s32.totalorder %s2312_s25, 0 }
 0x277   : > { %p2323_p13 = scmp.ge.s32.totalorder %s1901_s21, 2  ;;  %s1413_s17 = scalar_lea.sflag [#allocation5], %s1412_s28 }
 0x279   : > { %p1595_p3 = pnand %p2323_p13, %p2322_p10 }
 0x27b   : > { %1884 = dma.done.wait (!%p1595_p3), %s1413_s17, 512  }
 0x27c   : > { %1886 = vsyncadd (!%p1595_p3), %s1413_s17, 4294966784  ;;  %p19_p7 = scmp.ge.s32.totalorder %s2008_s30, 4   ;;  %s2324_s18 = smov %s1893_s19 }
 0x27d   : > { %s2325_s19 = smov %s1897_s20  ;;  %s2326_s20 = smov %s2039_s8 }
 0x27e   : > { %s2327_s21 = smov %s2008_s30  ;;  %21 = sbr.rel (!%p19_p7) target bundleno = 6 (0x6), region = 97 }
 0x285   :  { %1418 = vsyncpa [#allocation4], 1 }
 0x286   :  { %1420 = vsyncpa [#allocation4 + $0x1], 1 }
 0x287   :  { %1421 = vsyncpa [#allocation7], 1 }
 0x288   :  { %1422 = vsyncpa [#allocation5], 1 }
 0x289   :  { %1424 = vsyncpa [#allocation5 + $0x1], 1 }

</bundles_post_ra>
